<compile_context>
chip_gen: v7x
topology: tpu7x:2x2x1
jax: 0.10.0
libtpu: 0.0.40
codegen_flags: <defaults>
</compile_context>

<pallas_src>
import jax
import jax.numpy as jnp
from jax.experimental import pallas as pl
from jax.experimental.pallas import tpu as pltpu


def _round_up(x, m):
    return ((x + m - 1) // m) * m


def autoencoder_kernel(x_ref, we_ref, be_ref, wd_ref, bd_ref, o_ref, h_ref):
    # Encoder: h = x @ We + be   (bf16 operands on the MXU, f32 accumulate,
    # bias add in f32).  Stage h through VMEM scratch to keep vreg pressure low.
    h_ref[...] = (
        jnp.dot(x_ref[...], we_ref[...], preferred_element_type=jnp.float32)
        + be_ref[...]
    )
    # Decoder: y = h @ Wd + bd   (cast intermediate back to the MXU dtype).
    y = (
        jnp.dot(h_ref[...].astype(wd_ref.dtype), wd_ref[...],
                preferred_element_type=jnp.float32)
        + bd_ref[...]
    )
    o_ref[...] = y.astype(o_ref.dtype)


def autoencoder_forward(x, w_enc, b_enc, w_dec, b_dec, *, block_b=256,
                        compute_dtype=jnp.bfloat16):
    """Forward of AutoEncoder: y = (x @ We + be) @ Wd + bd.

    x:      (B, Din)
    w_enc:  (Din, Dout)   (pre-transposed vs PyTorch)
    b_enc:  (Dout,) or (1, Dout)
    w_dec:  (Dout, Din)
    b_dec:  (Din,) or (1, Din)
    Returns (B, Din) in x.dtype.
    """
    B, Din = x.shape
    Dout = w_enc.shape[1]
    out_dtype = x.dtype

    b_enc = b_enc.reshape(1, -1).astype(jnp.float32)
    b_dec = b_dec.reshape(1, -1).astype(jnp.float32)

    # Pad feature dims to multiples of 128 (lane-dense, unmasked stores) and
    # batch to a multiple of the batch tile.
    Din_p = _round_up(Din, 128)
    Dout_p = _round_up(Dout, 128)
    TB = min(block_b, _round_up(B, 128))   # batch tile, multiple of 128
    B_p = _round_up(B, TB)

    cd = compute_dtype
    xp = jnp.zeros((B_p, Din_p), cd).at[:B, :Din].set(x.astype(cd))
    wep = jnp.zeros((Din_p, Dout_p), cd).at[:Din, :Dout].set(w_enc.astype(cd))
    bep = jnp.zeros((1, Dout_p), jnp.float32).at[:, :Dout].set(b_enc)
    wdp = jnp.zeros((Dout_p, Din_p), cd).at[:Dout, :Din].set(w_dec.astype(cd))
    bdp = jnp.zeros((1, Din_p), jnp.float32).at[:, :Din].set(b_dec)

    grid = (B_p // TB,)

    bpe_c = jnp.dtype(cd).itemsize
    bpe_o = jnp.dtype(out_dtype).itemsize

    # VMEM budget: double-buffered x/out tiles + resident weights/biases +
    # f32 intermediate scratch.  Clamp at v7x's 64 MiB physical ceiling.
    # TODO(synk): for very wide models where the resident weights alone exceed
    # this budget, add a K-reduction grid axis with an f32 accumulator instead.
    est_vmem = (
        2 * 2 * TB * Din_p * bpe_c            # x tile, double-buffered
        + 2 * TB * Din_p * bpe_o              # out tile, double-buffered
        + (Din_p * Dout_p + Dout_p * Din_p) * bpe_c   # resident weights
        + (Dout_p + Din_p) * 4                # resident biases
        + TB * Dout_p * 4                     # h scratch
    )
    vmem_limit = min(64 * 1024 * 1024,
                     max(int(1.5 * est_vmem) + (8 << 20), 16 << 20))

    flops = 2 * B_p * Din_p * Dout_p * 2      # two matmuls
    bytes_accessed = (
        B_p * Din_p * bpe_c                   # x in
        + B_p * Din_p * bpe_o                 # y out
        + (Din_p * Dout_p + Dout_p * Din_p) * bpe_c
        + (Din_p + Dout_p) * 4
    )

    out_p = pl.pallas_call(
        autoencoder_kernel,
        out_shape=jax.ShapeDtypeStruct((B_p, Din_p), out_dtype),
        grid=grid,
        in_specs=[
            pl.BlockSpec((TB, Din_p), lambda i: (i, 0)),       # x: streamed
            pl.BlockSpec((Din_p, Dout_p), lambda i: (0, 0)),   # We: resident
            pl.BlockSpec((1, Dout_p), lambda i: (0, 0)),       # be: resident
            pl.BlockSpec((Dout_p, Din_p), lambda i: (0, 0)),   # Wd: resident
            pl.BlockSpec((1, Din_p), lambda i: (0, 0)),        # bd: resident
        ],
        out_specs=pl.BlockSpec((TB, Din_p), lambda i: (i, 0)),
        scratch_shapes=[pltpu.VMEM((TB, Dout_p), jnp.float32)],
        compiler_params=pltpu.CompilerParams(
            dimension_semantics=("parallel",),
            vmem_limit_bytes=vmem_limit),
        cost_estimate=pl.CostEstimate(flops=flops, transcendentals=0,
                                      bytes_accessed=bytes_accessed),
    )(xp, wep, bep, wdp, bdp)

    return out_p[:B, :Din]


def init_params(key, in_channels, out_channels, dtype=jnp.float32):
    """Deterministic init mimicking nn.Linear's U(-1/sqrt(fan_in), 1/sqrt(fan_in))."""
    k1, k2, k3, k4 = jax.random.split(key, 4)
    bound_e = 1.0 / (in_channels ** 0.5)
    bound_d = 1.0 / (out_channels ** 0.5)
    # stored pre-transposed: (in, out)
    w_enc = jax.random.uniform(k1, (in_channels, out_channels), dtype,
                               minval=-bound_e, maxval=bound_e)
    b_enc = jax.random.uniform(k2, (1, out_channels), dtype,
                               minval=-bound_e, maxval=bound_e)
    w_dec = jax.random.uniform(k3, (out_channels, in_channels), dtype,
                               minval=-bound_d, maxval=bound_d)
    b_dec = jax.random.uniform(k4, (1, in_channels), dtype,
                               minval=-bound_d, maxval=bound_d)
    return w_enc, b_enc, w_dec, b_dec


if __name__ == "__main__":
    key = jax.random.PRNGKey(0)
    batch, in_channels, out_channels = 8, 32, 16

    kx, kp = jax.random.split(key)
    x = jax.random.normal(kx, (batch, in_channels), jnp.float32)
    w_enc, b_enc, w_dec, b_dec = init_params(kp, in_channels, out_channels)

    out = autoencoder_forward(x, w_enc, b_enc, w_dec, b_dec)
    out = jax.block_until_ready(out)
    assert out.shape == (batch, in_channels)

    # Reference following the same bf16-operand / f32-accumulation recipe.
    cd = jnp.bfloat16
    h_ref = jnp.dot(x.astype(cd), w_enc.astype(cd),
                    preferred_element_type=jnp.float32) + b_enc
    y_ref = jnp.dot(h_ref.astype(cd), w_dec.astype(cd),
                    preferred_element_type=jnp.float32) + b_dec
    assert jnp.allclose(out, y_ref, atol=5e-3, rtol=5e-3), \
        f"max abs err vs bf16 ref: {jnp.max(jnp.abs(out - y_ref))}"

    # Loose sanity check against the pure-f32 math.
    ref_f32 = (x @ w_enc + b_enc) @ w_dec + b_dec
    assert jnp.allclose(out, ref_f32, atol=5e-2, rtol=5e-2), \
        f"max abs err vs f32 ref: {jnp.max(jnp.abs(out - ref_f32))}"

    print("KERNEL_OK")
</pallas_src>

<mosaic_0001>
module attributes {stable_mosaic.version = 11 : i64} {
  func.func @autoencoder_kernel(%arg0: i32, %arg1: memref<128x128xbf16, #tpu.memory_space<vmem>>, %arg2: memref<128x128xbf16, #tpu.memory_space<vmem>>, %arg3: memref<1x128xf32, #tpu.memory_space<vmem>>, %arg4: memref<128x128xbf16, #tpu.memory_space<vmem>>, %arg5: memref<1x128xf32, #tpu.memory_space<vmem>>, %arg6: memref<128x128xf32, #tpu.memory_space<vmem>>, %arg7: memref<128x128xf32, #tpu.memory_space<vmem>>) attributes {dimension_semantics = [#tpu.dimension_semantics<parallel>], iteration_bounds = array<i64: 1>, scalar_prefetch = 0 : i64, scratch_operands = 1 : i64, tpu.core_type = #tpu.core_type<tc>, window_params = [{transform_indices = @transform_0, window_bounds = array<i64: 128, 128>}, {pipeline_mode = #tpu.pipeline_mode<synchronous>, transform_indices = @transform_1, window_bounds = array<i64: 128, 128>}, {pipeline_mode = #tpu.pipeline_mode<synchronous>, transform_indices = @transform_2, window_bounds = array<i64: 1, 128>}, {pipeline_mode = #tpu.pipeline_mode<synchronous>, transform_indices = @transform_3, window_bounds = array<i64: 128, 128>}, {pipeline_mode = #tpu.pipeline_mode<synchronous>, transform_indices = @transform_4, window_bounds = array<i64: 1, 128>}, {transform_indices = @transform_5, window_bounds = array<i64: 128, 128>}]} {
    %c0 = arith.constant 0 : index
    %c0_0 = arith.constant 0 : index
    %0 = vector.load %arg1[%c0, %c0_0] : memref<128x128xbf16, #tpu.memory_space<vmem>>, vector<128x128xbf16>
    %c0_1 = arith.constant 0 : index
    %c0_2 = arith.constant 0 : index
    %1 = vector.load %arg2[%c0_1, %c0_2] : memref<128x128xbf16, #tpu.memory_space<vmem>>, vector<128x128xbf16>
    %cst = arith.constant dense<0.000000e+00> : vector<128x128xf32>
    %2 = tpu.matmul %0, %1, %cst {dimension_numbers = #tpu.dot_dimension_numbers<[1], [0], [0], [1], [0, 0, 1, 1], [], []>} : vector<128x128xbf16>, vector<128x128xbf16>, vector<128x128xf32> -> vector<128x128xf32>
    %c0_3 = arith.constant 0 : index
    %c0_4 = arith.constant 0 : index
    %3 = vector.load %arg3[%c0_3, %c0_4] : memref<1x128xf32, #tpu.memory_space<vmem>>, vector<1x128xf32>
    %4 = vector.broadcast %3 : vector<1x128xf32> to vector<128x128xf32>
    %5 = arith.addf %2, %4 : vector<128x128xf32>
    %c0_5 = arith.constant 0 : index
    %c0_6 = arith.constant 0 : index
    %6 = vector.load %arg7[%c0_5, %c0_6] : memref<128x128xf32, #tpu.memory_space<vmem>>, vector<128x128xf32>
    tpu.vector_store %arg7[%c0_5, %c0_6], %5 {strides = array<i32>} : memref<128x128xf32, #tpu.memory_space<vmem>>, vector<128x128xf32>,
    %c0_7 = arith.constant 0 : index
    %c0_8 = arith.constant 0 : index
    %7 = vector.load %arg7[%c0_7, %c0_8] : memref<128x128xf32, #tpu.memory_space<vmem>>, vector<128x128xf32>
    %8 = arith.truncf %7 : vector<128x128xf32> to vector<128x128xbf16>
    %c0_9 = arith.constant 0 : index
    %c0_10 = arith.constant 0 : index
    %9 = vector.load %arg4[%c0_9, %c0_10] : memref<128x128xbf16, #tpu.memory_space<vmem>>, vector<128x128xbf16>
    %cst_11 = arith.constant dense<0.000000e+00> : vector<128x128xf32>
    %10 = tpu.matmul %8, %9, %cst_11 {dimension_numbers = #tpu.dot_dimension_numbers<[1], [0], [0], [1], [0, 0, 1, 1], [], []>} : vector<128x128xbf16>, vector<128x128xbf16>, vector<128x128xf32> -> vector<128x128xf32>
    %c0_12 = arith.constant 0 : index
    %c0_13 = arith.constant 0 : index
    %11 = vector.load %arg5[%c0_12, %c0_13] : memref<1x128xf32, #tpu.memory_space<vmem>>, vector<1x128xf32>
    %12 = vector.broadcast %11 : vector<1x128xf32> to vector<128x128xf32>
    %13 = arith.addf %10, %12 : vector<128x128xf32>
    %c0_14 = arith.constant 0 : index
    %c0_15 = arith.constant 0 : index
    %14 = vector.load %arg6[%c0_14, %c0_15] : memref<128x128xf32, #tpu.memory_space<vmem>>, vector<128x128xf32>
    tpu.vector_store %arg6[%c0_14, %c0_15], %13 {strides = array<i32>} : memref<128x128xf32, #tpu.memory_space<vmem>>, vector<128x128xf32>,
    return
  }
  func.func @transform_0(%arg0: i32) -> (i32, i32) {
    %c0_i32 = arith.constant 0 : i32
    %c0_i32_0 = arith.constant 0 : i32
    return %arg0, %c0_i32 : i32, i32
  }
  func.func @transform_1(%arg0: i32) -> (i32, i32) {
    %c0_i32 = arith.constant 0 : i32
    %c0_i32_0 = arith.constant 0 : i32
    %c0_i32_1 = arith.constant 0 : i32
    return %c0_i32, %c0_i32_0 : i32, i32
  }
  func.func @transform_2(%arg0: i32) -> (i32, i32) {
    %c0_i32 = arith.constant 0 : i32
    %c0_i32_0 = arith.constant 0 : i32
    %c0_i32_1 = arith.constant 0 : i32
    return %c0_i32, %c0_i32_0 : i32, i32
  }
  func.func @transform_3(%arg0: i32) -> (i32, i32) {
    %c0_i32 = arith.constant 0 : i32
    %c0_i32_0 = arith.constant 0 : i32
    %c0_i32_1 = arith.constant 0 : i32
    return %c0_i32, %c0_i32_0 : i32, i32
  }
  func.func @transform_4(%arg0: i32) -> (i32, i32) {
    %c0_i32 = arith.constant 0 : i32
    %c0_i32_0 = arith.constant 0 : i32
    %c0_i32_1 = arith.constant 0 : i32
    return %c0_i32, %c0_i32_0 : i32, i32
  }
  func.func @transform_5(%arg0: i32) -> (i32, i32) {
    %c0_i32 = arith.constant 0 : i32
    %c0_i32_0 = arith.constant 0 : i32
    return %arg0, %c0_i32 : i32, i32
  }
}

</mosaic_0001>

<bundles_post_ra>
// kernel: tpu_custom_call.1
= control target key start
LH: loop header
LB: loop body
LE: loop exit
PB: predicated region body
PF: predicated region fallthrough
CT: control target
= control target key end

     0   :  { %10 = vsyncpa [#allocation4], 0  ;;  %s893_s0 = inlined_call_operand.hbm [shape: bf16[128,128], index: 0, kind: input, shape index: {}]   ;;  %s894_s1 = inlined_call_operand.hbm [shape: bf16[128,128], index: 1, kind: input, shape index: {}]   ;;  %s895_s2 = inlined_call_operand.vmem [shape: f32[1,128], index: 2, kind: input, shape index: {}]   ;;  %s896_s3 = inlined_call_operand.hbm [shape: bf16[128,128], index: 3, kind: input, shape index: {}]   ;;  %s897_s4 = inlined_call_operand.vmem [shape: f32[1,128], index: 4, kind: input, shape index: {}]   ;;  %s898_s5 = inlined_call_operand.hbm [shape: f32[128,128], index: 5, kind: output, shape index: {}]  }
   0x1   :  { %11 = vsyncpa [#allocation7], 0 }
   0x2   :  { %12 = vsyncpa [#allocation5], 0  ;;  %s785_s18 = smov [#allocation6]   ;;  %s786_s20 = smov [#allocation3]  }
   0x3   :  { %s30_s19 = sshll.u32 %s785_s18, 4  ;;  %s18_s21 = sshll.u32 %s786_s20, 4  ;;  %s31_s19 = int_to_ptr.vmem [resolvable:$true] %s30_s19  ;;  %s823_s21 = int_to_ptr.vmem [resolvable:$true] %s18_s21 }
   0x4   :  { %s691_s24 = scalar_lea.hbm %s894_s1, 1024 }
   0x5   :  { %p692_p0 = scmp.ne.s32.totalorder %s894_s1, %s691_s24  ;;  %p695_p1 = scmp.lt.u32.totalorder %s691_s24, %s894_s1 }
   0x7   :  { %p697_p2 = pnand %p695_p1, %p692_p0 }
   0x9   :  { %700 = shalt.err (!%p697_p2)
}
   0xa   :  { %s701_s29 = scalar_lea.vmem %s31_s19, 1024  ;;  %p706_p4 = scmp.lt.s32.totalorder %s31_s19, %s31_s19 }
   0xb   :  { %p702_p3 = scmp.ne.s32.totalorder %s31_s19, %s701_s29  ;;  %p707_p5 = scmp.lt.s32.totalorder %s701_s29, %s701_s29 }
   0xd   :  { %p708_p6 = por %p707_p5, %p706_p4 }
   0xf   :  { %p709_p7 = pnand %p708_p6, %p702_p3 }
  0x11   :  { %712 = shalt.err (!%p709_p7)
}
  0x12   :  { %s787_s30 = smov 64   ;;  %s788_s6 = smov 4  }
  0x13   :  { %36 = dma.hbm_to_vmem [thread:$0]  %s894_s1, 1024, %s31_s19, [#allocation7], %s787_s30, %s787_s30, %s788_s6  }
  0x14   :  { %s713_s11 = scalar_lea.hbm %s893_s0, 1024 }
  0x15   :  { %p714_p8 = scmp.ne.s32.totalorder %s893_s0, %s713_s11  ;;  %p717_p9 = scmp.lt.u32.totalorder %s713_s11, %s893_s0 }
  0x17   :  { %p719_p10 = pnand %p717_p9, %p714_p8 }
  0x19   :  { %722 = shalt.err (!%p719_p10)
}
  0x1a   :  { %s723_s16 = scalar_lea.vmem %s823_s21, 1024  ;;  %p728_p12 = scmp.lt.s32.totalorder %s823_s21, %s823_s21 }
  0x1b   :  { %p724_p11 = scmp.ne.s32.totalorder %s823_s21, %s723_s16  ;;  %p729_p13 = scmp.lt.s32.totalorder %s723_s16, %s723_s16 }
  0x1d   :  { %p730_p0 = por %p729_p13, %p728_p12 }
  0x1f   :  { %p731_p1 = pnand %p730_p0, %p724_p11 }
  0x21   :  { %734 = shalt.err (!%p731_p1)
}
  0x22   :  { %24 = dma.hbm_to_vmem [thread:$0]  %s893_s0, 1024, %s823_s21, [#allocation4], %s787_s30, %s787_s30, %s788_s6  }
  0x23   :  { %s789_s18 = smov [#allocation8]   ;;  %s735_s23 = scalar_lea.hbm %s896_s3, 1024 }
  0x24   :  { %s44_s19 = sshll.u32 %s789_s18, 4  ;;  %p736_p2 = scmp.ne.s32.totalorder %s896_s3, %s735_s23  ;;  %s45_s19 = int_to_ptr.vmem [resolvable:$true] %s44_s19 }
  0x25   :  { %p739_p3 = scmp.lt.u32.totalorder %s735_s23, %s896_s3 }
  0x27   :  { %p741_p4 = pnand %p739_p3, %p736_p2 }
  0x29   :  { %744 = shalt.err (!%p741_p4)
}
  0x2a   :  { %s745_s28 = scalar_lea.vmem %s45_s19, 1024  ;;  %p750_p6 = scmp.lt.s32.totalorder %s45_s19, %s45_s19 }
  0x2b   :  { %p746_p5 = scmp.ne.s32.totalorder %s45_s19, %s745_s28  ;;  %p751_p7 = scmp.lt.s32.totalorder %s745_s28, %s745_s28 }
  0x2d   :  { %p752_p8 = por %p751_p7, %p750_p6 }
  0x2f   :  { %p753_p9 = pnand %p752_p8, %p746_p5 }
  0x31   :  { %756 = shalt.err (!%p753_p9)
}
  0x32   :  { %50 = dma.hbm_to_vmem [thread:$0]  %s896_s3, 1024, %s45_s19, [#allocation7], %s787_s30, %s787_s30, %s788_s6  }
  0x33   :  { %779 = dma.done.wait [#allocation4], 1024  }
  0x34   :  { %780 = vsyncadd [#allocation4], 4294966272 }
  0x35   :  { %781 = dma.done.wait [#allocation7], 2048  }
  0x36   :  { %782 = vsyncadd [#allocation7], 4294965248  ;;  %v667_v0 = vld [vmem:[#allocation6] sm:$0xff]   ;;  %v668_v1 = vld [vmem:[#allocation6 + $0x8] sm:$0xff]  }
  0x37   :  { %595 = vmatprep.subr.bf16.mxu0 %v667_v0  ;;  %v669_v2 = vld [vmem:[#allocation6 + $0x10] sm:$0xff]   ;;  %v670_v3 = vld [vmem:[#allocation6 + $0x18] sm:$0xff]   ;;  %v675_v4 = vld [vmem:[#allocation3] sm:$0xff]  }
  0x38   :  { %596 = vmatpush3.bf16.msra.mxu0 %v667_v0  ;;  %611 = vmatprep.mubr.bf16.mxu0 %v675_v4  ;;  %v671_v5 = vld [vmem:[#allocation6 + $0x20] sm:$0xff]   ;;  %v672_v6 = vld [vmem:[#allocation6 + $0x28] sm:$0xff]   ;;  %v673_v9 = vld [vmem:[#allocation6 + $0x30] sm:$0xff]  }
  0x39   :  { %597 = vmatprep.subr.bf16.mxu0 %v668_v1  ;;  %v683_v7 = vld [vmem:[#allocation8] sm:$0xff]   ;;  %v684_v8 = vld [vmem:[#allocation8 + $0x8] sm:$0xff]   ;;  %v685_v10 = vld [vmem:[#allocation8 + $0x10] sm:$0xff]  }
  0x3a   :  { %627 = vmatprep.subr.bf16.mxu1 %v683_v7  ;;  %v674_v11 = vld [vmem:[#allocation6 + $0x38] sm:$0xff]   ;;  %v687_v13 = vld [vmem:[#allocation8 + $0x20] sm:$0xff]   ;;  %v676_v14 = vld [vmem:[#allocation3 + $0x8] sm:$0xff]  }
  0x3b   :  { %628 = vmatpush3.bf16.msra.mxu1 %v683_v7  ;;  %v686_v12 = vld [vmem:[#allocation8 + $0x18] sm:$0xff]   ;;  %v677_v15 = vld [vmem:[#allocation3 + $0x10] sm:$0xff]   ;;  %v688_v16 = vld [vmem:[#allocation8 + $0x28] sm:$0xff]  }
  0x3c   :  { %598 = vmatpush3.bf16.msra.mxu0 %v668_v1  ;;  %629 = vmatprep.subr.bf16.mxu1 %v684_v8  ;;  %v678_v17 = vld [vmem:[#allocation3 + $0x18] sm:$0xff]   ;;  %v679_v18 = vld [vmem:[#allocation3 + $0x20] sm:$0xff]   ;;  %v680_v19 = vld [vmem:[#allocation3 + $0x28] sm:$0xff]  }
  0x3d   :  { %599 = vmatprep.subr.bf16.mxu0 %v669_v2  ;;  %v681_v20 = vld [vmem:[#allocation3 + $0x30] sm:$0xff]   ;;  %v682_v21 = vld [vmem:[#allocation3 + $0x38] sm:$0xff]   ;;  %v537_v25 = vld [vmem:[%s895_s2] ss:$0 sm:$0xff] }
  0x3e   :  { %v689_v22 = vld [vmem:[#allocation8 + $0x30] sm:$0xff]   ;;  %v690_v23 = vld [vmem:[#allocation8 + $0x38] sm:$0xff]   ;;  %v554_v1 = vld [vmem:[%s897_s4] ss:$0 sm:$0xff]  ;;  %s790_s4 = smov [#allocation9]  }
  0x3f   :  { %630 = vmatpush3.bf16.msra.mxu1 %v684_v8  ;;  %s524_s6 = sshll.u32 %s790_s4, 4  ;;  %s525_s6 = int_to_ptr.vmem [resolvable:$true] %s524_s6 }
  0x40   :  { %600 = vmatpush3.bf16.msra.mxu0 %v669_v2  ;;  %631 = vmatprep.subr.bf16.mxu1 %v685_v10  ;;  %s757_s7 = scalar_lea.vmem %s525_s6, 2048  ;;  %p762_p11 = scmp.lt.s32.totalorder %s525_s6, %s525_s6 }
  0x41   :  { %601 = vmatprep.subr.bf16.mxu0 %v670_v3  ;;  %p758_p10 = scmp.ne.s32.totalorder %s525_s6, %s757_s7  ;;  %p763_p12 = scmp.lt.s32.totalorder %s757_s7, %s757_s7 }
  0x43   :  { %632 = vmatpush3.bf16.msra.mxu1 %v685_v10  ;;  %p764_p13 = por %p763_p12, %p762_p11 }
  0x44   :  { %602 = vmatpush3.bf16.msra.mxu0 %v670_v3  ;;  %633 = vmatprep.subr.bf16.mxu1 %v686_v12 }
  0x45   :  { %603 = vmatprep.subr.bf16.mxu0 %v671_v5  ;;  %p765_p0 = pnand %p764_p13, %p758_p10 }
  0x47   :  { %634 = vmatpush3.bf16.msra.mxu1 %v686_v12 }
  0x48   :  { %604 = vmatpush3.bf16.msra.mxu0 %v671_v5  ;;  %635 = vmatprep.subr.bf16.mxu1 %v687_v13 }
  0x49   :  { %605 = vmatprep.subr.bf16.mxu0 %v672_v6 }
  0x4b   :  { %636 = vmatpush3.bf16.msra.mxu1 %v687_v13 }
  0x4c   :  { %606 = vmatpush3.bf16.msra.mxu0 %v672_v6  ;;  %637 = vmatprep.subr.bf16.mxu1 %v688_v16 }
  0x4d   :  { %607 = vmatprep.subr.bf16.mxu0 %v673_v9 }
  0x4f   :  { %638 = vmatpush3.bf16.msra.mxu1 %v688_v16 }
  0x50   :  { %608 = vmatpush3.bf16.msra.mxu0 %v673_v9  ;;  %639 = vmatprep.subr.bf16.mxu1 %v689_v22 }
  0x51   :  { %609 = vmatprep.subr.bf16.mxu0 %v674_v11 }
  0x53   :  { %640 = vmatpush3.bf16.msra.mxu1 %v689_v22 }
  0x54   :  { %610 = vmatpush3.bf16.msra.mxu0 %v674_v11  ;;  %641 = vmatprep.subr.bf16.mxu1 %v690_v23 }
  0x57   :  { %612 = vmatmul.mubr.bf16.vlgmr.msra.gmra.mrb[0].mxu0 %v676_v14  ;;  %642 = vmatpush3.bf16.msra.mxu1 %v690_v23 }
  0x58   :  { %615 = vmatprep.mubr.bf16.mxu0 %v677_v15 }
  0x5f   :  { %616 = vmatmul.mubr.bf16.gmra.mrb[4].mxu0 %v678_v17 }
  0x60   :  { %619 = vmatprep.mubr.bf16.mxu0 %v679_v18 }
  0x67   :  { %620 = vmatmul.mubr.bf16.gmra.mrb[8].mxu0 %v680_v19 }
  0x68   :  { %623 = vmatprep.mubr.bf16.mxu0 %v681_v20 }
  0x6f   :  { %624 = vmatmul.mubr.bf16.gmra.mrb[12].mxu0 %v682_v21 }
 0x12a   :  { %v613_v24 = vpop.f32.mrb[0].mxu0 }
 0x12b   :  { %v232_v26 = vpop.f32.mrb[1].mxu0  ;;  %v241_v28 = vadd.f32 %v613_v24, %v537_v25 }
 0x12c   :  { %v614_v27 = vpop.f32.mrb[2].mxu0  ;;  %v233_v31 = vadd.f32 %v537_v25, %v232_v26 }
 0x12d   :  { %v244_v29 = vadd.f32 %v614_v27, %v537_v25  ;;  %v235_v30 = vpop.f32.mrb[3].mxu0 }
 0x12e   :  { %v236_v32 = vadd.f32 %v537_v25, %v235_v30 }
 0x12f   :  { %v328_v33 = vpack.c.bf16 %v244_v29, %v241_v28 }
 0x130   :  { %v327_v34 = vpack.c.bf16 %v236_v32, %v233_v31 }
 0x132   :  { %v617_v35 = vpop.f32.mrb[4].mxu0  ;;  %643 = vmatprep.mubr.bf16.mxu1 %v327_v34 }
 0x133   :  { %v248_v36 = vpop.f32.mrb[5].mxu0  ;;  %644 = vmatmul.mubr.bf16.vlgmr.msra.gmra.mrb[0].mxu1 %v328_v33  ;;  %v257_v38 = vadd.f32 %v617_v35, %v537_v25 }
 0x134   :  { %v618_v37 = vpop.f32.mrb[6].mxu0  ;;  %v249_v41 = vadd.f32 %v537_v25, %v248_v36 }
 0x135   :  { %v260_v39 = vadd.f32 %v618_v37, %v537_v25  ;;  %v251_v40 = vpop.f32.mrb[7].mxu0 }
 0x136   :  { %v252_v42 = vadd.f32 %v537_v25, %v251_v40 }
 0x137   :  { %v330_v43 = vpack.c.bf16 %v260_v39, %v257_v38 }
 0x138   :  { %v329_v44 = vpack.c.bf16 %v252_v42, %v249_v41 }
 0x13a   :  { %v621_v45 = vpop.f32.mrb[8].mxu0  ;;  %647 = vmatprep.mubr.bf16.mxu1 %v329_v44 }
 0x13b   :  { %v264_v46 = vpop.f32.mrb[9].mxu0  ;;  %648 = vmatmul.mubr.bf16.gmra.mrb[4].mxu1 %v330_v43  ;;  %v273_v48 = vadd.f32 %v621_v45, %v537_v25 }
 0x13c   :  { %v622_v47 = vpop.f32.mrb[10].mxu0  ;;  %v265_v51 = vadd.f32 %v537_v25, %v264_v46 }
 0x13d   :  { %v276_v49 = vadd.f32 %v622_v47, %v537_v25  ;;  %v267_v50 = vpop.f32.mrb[11].mxu0 }
 0x13e   :  { %v268_v52 = vadd.f32 %v537_v25, %v267_v50 }
 0x13f   :  { %v332_v53 = vpack.c.bf16 %v276_v49, %v273_v48 }
 0x140   :  { %v331_v54 = vpack.c.bf16 %v268_v52, %v265_v51 }
 0x142   :  { %v625_v55 = vpop.f32.mrb[12].mxu0  ;;  %651 = vmatprep.mubr.bf16.mxu1 %v331_v54 }
 0x143   :  { %v280_v56 = vpop.f32.mrb[13].mxu0  ;;  %652 = vmatmul.mubr.bf16.gmra.mrb[8].mxu1 %v332_v53  ;;  %v289_v58 = vadd.f32 %v625_v55, %v537_v25 }
 0x144   :  { %v626_v57 = vpop.f32.mrb[14].mxu0  ;;  %v281_v61 = vadd.f32 %v537_v25, %v280_v56 }
 0x145   :  { %v292_v59 = vadd.f32 %v626_v57, %v537_v25  ;;  %v283_v60 = vpop.f32.mrb[15].mxu0 }
 0x146   :  { %v284_v62 = vadd.f32 %v537_v25, %v283_v60 }
 0x147   :  { %v334_v63 = vpack.c.bf16 %v292_v59, %v289_v58 }
 0x148   :  { %v333_v0 = vpack.c.bf16 %v284_v62, %v281_v61 }
 0x14a   :  { %655 = vmatprep.mubr.bf16.mxu1 %v333_v0 }
 0x14b   :  { %656 = vmatmul.mubr.bf16.gmra.mrb[12].mxu1 %v334_v63 }
 0x206   :  { %v645_v2 = vpop.f32.mrb[0].mxu1 }
 0x207   :  { %v449_v3 = vadd.f32 %v645_v2, %v554_v1  ;;  %v440_v4 = vpop.f32.mrb[1].mxu1 }
 0x208   :  { %v441_v5 = vadd.f32 %v554_v1, %v440_v4  ;;  %v646_v6 = vpop.f32.mrb[2].mxu1 }
 0x209   :  { %505 = vst [vmem:[#allocation9 + $0x10] sm:$0xff] %v449_v3  ;;  %v452_v7 = vadd.f32 %v646_v6, %v554_v1  ;;  %v443_v8 = vpop.f32.mrb[3].mxu1 }
 0x20a   :  { %503 = vst [vmem:[#allocation9] sm:$0xff] %v441_v5  ;;  %v444_v9 = vadd.f32 %v554_v1, %v443_v8 }
 0x20b   :  { %506 = vst [vmem:[#allocation9 + $0x18] sm:$0xff] %v452_v7 }
 0x20c   :  { %504 = vst [vmem:[#allocation9 + $0x8] sm:$0xff] %v444_v9 }
 0x20e   :  { %v649_v10 = vpop.f32.mrb[4].mxu1 }
 0x20f   :  { %v465_v11 = vadd.f32 %v649_v10, %v554_v1  ;;  %v456_v12 = vpop.f32.mrb[5].mxu1 }
 0x210   :  { %v457_v13 = vadd.f32 %v554_v1, %v456_v12  ;;  %v650_v14 = vpop.f32.mrb[6].mxu1 }
 0x211   :  { %509 = vst [vmem:[#allocation9 + $0x30] sm:$0xff] %v465_v11  ;;  %v468_v15 = vadd.f32 %v650_v14, %v554_v1  ;;  %v459_v16 = vpop.f32.mrb[7].mxu1 }
 0x212   :  { %507 = vst [vmem:[#allocation9 + $0x20] sm:$0xff] %v457_v13  ;;  %v460_v17 = vadd.f32 %v554_v1, %v459_v16 }
 0x213   :  { %510 = vst [vmem:[#allocation9 + $0x38] sm:$0xff] %v468_v15 }
 0x214   :  { %508 = vst [vmem:[#allocation9 + $0x28] sm:$0xff] %v460_v17 }
 0x216   :  { %v653_v18 = vpop.f32.mrb[8].mxu1 }
 0x217   :  { %v481_v19 = vadd.f32 %v653_v18, %v554_v1  ;;  %v472_v20 = vpop.f32.mrb[9].mxu1 }
 0x218   :  { %v473_v21 = vadd.f32 %v554_v1, %v472_v20  ;;  %v654_v22 = vpop.f32.mrb[10].mxu1 }
 0x219   :  { %513 = vst [vmem:[#allocation9 + $0x50] sm:$0xff] %v481_v19  ;;  %v484_v23 = vadd.f32 %v654_v22, %v554_v1  ;;  %v475_v24 = vpop.f32.mrb[11].mxu1 }
 0x21a   :  { %511 = vst [vmem:[#allocation9 + $0x40] sm:$0xff] %v473_v21  ;;  %v476_v25 = vadd.f32 %v554_v1, %v475_v24 }
 0x21b   :  { %514 = vst [vmem:[#allocation9 + $0x58] sm:$0xff] %v484_v23 }
 0x21c   :  { %512 = vst [vmem:[#allocation9 + $0x48] sm:$0xff] %v476_v25 }
 0x21e   :  { %v657_v26 = vpop.f32.mrb[12].mxu1 }
 0x21f   :  { %v497_v27 = vadd.f32 %v657_v26, %v554_v1  ;;  %v488_v28 = vpop.f32.mrb[13].mxu1 }
 0x220   :  { %v489_v29 = vadd.f32 %v554_v1, %v488_v28  ;;  %v658_v30 = vpop.f32.mrb[14].mxu1 }
 0x221   :  { %517 = vst [vmem:[#allocation9 + $0x70] sm:$0xff] %v497_v27  ;;  %v500_v31 = vadd.f32 %v658_v30, %v554_v1  ;;  %v491_v32 = vpop.f32.mrb[15].mxu1 }
 0x222   :  { %515 = vst [vmem:[#allocation9 + $0x60] sm:$0xff] %v489_v29  ;;  %v492_v33 = vadd.f32 %v554_v1, %v491_v32 }
 0x223   :  { %518 = vst [vmem:[#allocation9 + $0x78] sm:$0xff] %v500_v31 }
 0x224   :  { %516 = vst [vmem:[#allocation9 + $0x68] sm:$0xff] %v492_v33 }
 0x225   :  { %768 = shalt.err (!%p765_p0)
}
 0x226   :  { %s769_s10 = scalar_lea.hbm %s898_s5, 2048 }
 0x227   :  { %p770_p1 = scmp.ne.s32.totalorder %s898_s5, %s769_s10  ;;  %p773_p2 = scmp.lt.u32.totalorder %s769_s10, %s898_s5 }
 0x229   :  { %p775_p3 = pnand %p773_p2, %p770_p1 }
 0x22b   :  { %778 = shalt.err (!%p775_p3)
}
 0x22c   :  { %s791_s15 = smov 128   ;;  %s792_s16 = smov 8  }
 0x22d   :  { %530 = dma.vmem_to_hbm [thread:$0]  %s525_s6, 2048, %s898_s5, [#allocation5], %s791_s15, %s791_s15, %s792_s16  }
 0x22e   :  { %783 = dma.done.wait [#allocation5], 2048  }
 0x22f   :  { %784 = vsyncadd [#allocation5], 4294965248 }
 0x230   :  { %534 = vsyncpa [#allocation4], 1 }
 0x231   :  { %535 = vsyncpa [#allocation7], 1 }
 0x232   :  { %536 = vsyncpa [#allocation5], 1 }

</bundles_post_ra>
